<compile_context>
chip_gen: v7x
topology: tpu7x:2x2x1
jax: 0.10.0
libtpu: 0.0.40
codegen_flags: <defaults>
</compile_context>

<pallas_src>
import functools
import math

import jax
import jax.numpy as jnp
from jax.experimental import pallas as pl
from jax.experimental.pallas import tpu as pltpu

_LN_10000 = math.log(10000.0)
_HALF_PI = 0.5 * math.pi


def _pe_add_kernel_2d(x_ref, o_ref, *, d_model, tile_l):
    """x_ref/o_ref: (Bb, C, TL) VMEM tiles. Adds the transposed sinusoidal PE."""
    _, C, TL = x_ref.shape
    l0 = pl.program_id(1) * tile_l  # position offset of this lane tile

    # Per-channel quantities on a (C, 1) column; broadcast across lanes below,
    # so exp is evaluated C times per grid step instead of C*TL times.
    c_i = jax.lax.broadcasted_iota(jnp.int32, (C, 1), 0)
    par = (c_i & 1).astype(jnp.float32)              # 0 -> sin row, 1 -> cos row
    c_even = (c_i - (c_i & 1)).astype(jnp.float32)   # 2 * (c // 2)
    inv_freq = jnp.exp(c_even * jnp.float32(-_LN_10000 / d_model))   # (C, 1)
    phase = par * jnp.float32(_HALF_PI)                              # (C, 1)

    # Positions across lanes for this tile.
    t = (l0 + jax.lax.broadcasted_iota(jnp.int32, (C, TL), 1)).astype(jnp.float32)

    # cos(a) == sin(a + pi/2): one transcendental per element instead of two.
    pe = jnp.sin(t * inv_freq + phase)               # (C, TL), f32

    # Compute the add in f32, single downcast at the store.
    o_ref[...] = (x_ref[...].astype(jnp.float32) + pe[None]).astype(o_ref.dtype)


def _pe_add_kernel_flat(x_ref, o_ref, *, d_model, seq_len, log2_l):
    """x_ref/o_ref: (Bb, C*L) lane-dense flattening of (Bb, C, L); L = 2**log2_l."""
    _, CL = x_ref.shape
    idx = jax.lax.broadcasted_iota(jnp.int32, (1, CL), 1)
    c = idx >> log2_l                                # channel index (idx // L)
    t = (idx & (seq_len - 1)).astype(jnp.float32)    # position index (idx % L)
    par = (c & 1).astype(jnp.float32)
    c_even = (c - (c & 1)).astype(jnp.float32)
    inv_freq = jnp.exp(c_even * jnp.float32(-_LN_10000 / d_model))
    pe = jnp.sin(t * inv_freq + par * jnp.float32(_HALF_PI))         # (1, CL)
    o_ref[...] = (x_ref[...].astype(jnp.float32) + pe).astype(o_ref.dtype)


def positional_encoding_1d(x, *, max_len=4096):
    """x: (B, d_model, L) array. Returns x + sinusoidal PE (broadcast over batch)."""
    B, C, L = x.shape
    assert 0 < L <= max_len, "sequence length exceeds max_len of the PE buffer"
    itemsize = jnp.dtype(x.dtype).itemsize

    # ---- tiny power-of-two L: flatten (C, L) onto lanes so every vreg lane is
    # ---- used and output stores are unmasked (lane-dense out_spec lever).
    if L < 128 and (L & (L - 1)) == 0:
        CL = C * L
        xf = x.reshape(B, CL)  # free row-major collapse of the trailing dims
        # Batch rows per block: keep in+out double-buffered blocks modest.
        Bb = max(1, min(B, (4 * 1024 * 1024) // max(1, CL * itemsize)))
        grid = (pl.cdiv(B, Bb),)
        kernel = functools.partial(
            _pe_add_kernel_flat, d_model=C, seq_len=L, log2_l=L.bit_length() - 1)
        out = pl.pallas_call(
            kernel,
            out_shape=jax.ShapeDtypeStruct((B, CL), x.dtype),
            grid=grid,
            in_specs=[pl.BlockSpec((Bb, CL), lambda i: (i, 0))],
            out_specs=pl.BlockSpec((Bb, CL), lambda i: (i, 0)),
            compiler_params=pltpu.CompilerParams(
                dimension_semantics=("parallel",)),
            cost_estimate=pl.CostEstimate(
                flops=B * CL,
                transcendentals=2 * grid[0] * CL,
                bytes_accessed=2 * B * CL * itemsize),
        )(xf)
        return out.reshape(B, C, L)

    # ---- general path: batch folded into the block, L tiled lane-dense.
    # 512-lane tiles sit near the HBM roofline; take the full L if shorter
    # (a full-extent block dim is always legal, even if not a multiple of 128).
    tl = L if L <= 512 else 512
    grid_l = pl.cdiv(L, tl)
    # Fold as many batch rows per block as fit in ~6 MiB per slab so the four
    # double-buffered slabs (in + out) stay well under v7x's 32 MiB VMEM scope.
    Bb = max(1, min(B, (6 * 1024 * 1024) // max(1, C * tl * itemsize)))
    grid_b = pl.cdiv(B, Bb)

    kernel = functools.partial(_pe_add_kernel_2d, d_model=C, tile_l=tl)
    return pl.pallas_call(
        kernel,
        out_shape=jax.ShapeDtypeStruct((B, C, L), x.dtype),
        grid=(grid_b, grid_l),
        in_specs=[pl.BlockSpec((Bb, C, tl), lambda b, l: (b, 0, l))],
        out_specs=pl.BlockSpec((Bb, C, tl), lambda b, l: (b, 0, l)),
        compiler_params=pltpu.CompilerParams(
            dimension_semantics=("parallel", "parallel")),
        cost_estimate=pl.CostEstimate(
            flops=B * C * L,
            transcendentals=grid_b * grid_l * C * (tl + 1),
            bytes_accessed=2 * B * C * L * itemsize),
    )(x)


def _reference(x, max_len=4096):
    """Pure-JAX reference mirroring the PyTorch module exactly."""
    B, C, L = x.shape
    d_model = C
    position = jnp.arange(0, max_len, dtype=jnp.float32)[:, None]
    div_term = jnp.exp(
        jnp.arange(0, d_model, 2, dtype=jnp.float32)
        * (-jnp.log(jnp.float32(10000.0)) / d_model))
    pe = jnp.zeros((max_len, d_model), jnp.float32)
    pe = pe.at[:, 0::2].set(jnp.sin(position * div_term))
    pe = pe.at[:, 1::2].set(jnp.cos(position * div_term))
    pe = pe[None]  # (1, max_len, d_model)
    return x + jnp.transpose(pe[:, :L], (0, 2, 1))


if __name__ == "__main__":
    key = jax.random.PRNGKey(0)

    # Primary small shape in the module's (batch, d_model, seq_len) convention.
    B, d_model, L = 2, 32, 16
    x = jax.random.normal(key, (B, d_model, L), dtype=jnp.float32)
    out = jax.block_until_ready(positional_encoding_1d(x))
    ref = _reference(x)
    assert out.shape == ref.shape and out.dtype == ref.dtype
    assert jnp.allclose(out, ref, atol=1e-5, rtol=1e-5)

    # Also exercise the tiled path (L >= 128, partial last L tile, batch folded).
    # Looser atol: cos(a) is computed as sin(a + pi/2); for angles up to ~640 the
    # f32 rounding of the shifted argument can deviate by ~half an ulp (~3e-5).
    B2, d2, L2 = 2, 16, 640
    x2 = jax.random.normal(jax.random.PRNGKey(0), (B2, d2, L2), dtype=jnp.float32)
    out2 = jax.block_until_ready(positional_encoding_1d(x2))
    ref2 = _reference(x2)
    assert out2.shape == ref2.shape and out2.dtype == ref2.dtype
    assert jnp.allclose(out2, ref2, atol=1e-4, rtol=1e-5)

    print("KERNEL_OK")
</pallas_src>

<mosaic_0001>
module attributes {stable_mosaic.version = 11 : i64} {
  func.func @_pe_add_kernel_flat(%arg0: i32, %arg1: memref<2x512xf32, #tpu.memory_space<vmem>>, %arg2: memref<2x512xf32, #tpu.memory_space<vmem>>) attributes {dimension_semantics = [#tpu.dimension_semantics<parallel>], iteration_bounds = array<i64: 1>, scalar_prefetch = 0 : i64, scratch_operands = 0 : i64, tpu.core_type = #tpu.core_type<tc>, window_params = [{transform_indices = @transform_0, window_bounds = array<i64: 2, 512>}, {transform_indices = @transform_1, window_bounds = array<i64: 2, 512>}]} {
    %0 = tpu.iota {dimensions = array<i32: 1>} : vector<1x512xi32>
    %c4_i32 = arith.constant 4 : i32
    %1 = vector.broadcast %c4_i32 : i32 to vector<1x512xi32>
    %2 = arith.shrsi %0, %1 : vector<1x512xi32>
    %c15_i32 = arith.constant 15 : i32
    %3 = vector.broadcast %c15_i32 : i32 to vector<1x512xi32>
    %4 = arith.andi %0, %3 : vector<1x512xi32>
    %5 = arith.sitofp %4 : vector<1x512xi32> to vector<1x512xf32>
    %c1_i32 = arith.constant 1 : i32
    %6 = vector.broadcast %c1_i32 : i32 to vector<1x512xi32>
    %7 = arith.andi %2, %6 : vector<1x512xi32>
    %8 = arith.sitofp %7 : vector<1x512xi32> to vector<1x512xf32>
    %c1_i32_0 = arith.constant 1 : i32
    %9 = vector.broadcast %c1_i32_0 : i32 to vector<1x512xi32>
    %10 = arith.andi %2, %9 : vector<1x512xi32>
    %11 = arith.subi %2, %10 : vector<1x512xi32>
    %12 = arith.sitofp %11 : vector<1x512xi32> to vector<1x512xf32>
    %cst = arith.constant -0.287823141 : f32
    %13 = vector.broadcast %cst : f32 to vector<1x512xf32>
    %14 = arith.mulf %12, %13 : vector<1x512xf32>
    %15 = math.exp %14 : vector<1x512xf32>
    %16 = arith.mulf %5, %15 : vector<1x512xf32>
    %cst_1 = arith.constant 1.57079637 : f32
    %17 = vector.broadcast %cst_1 : f32 to vector<1x512xf32>
    %18 = arith.mulf %8, %17 : vector<1x512xf32>
    %19 = arith.addf %16, %18 : vector<1x512xf32>
    %20 = math.sin %19 : vector<1x512xf32>
    %c0 = arith.constant 0 : index
    %c0_2 = arith.constant 0 : index
    %21 = vector.load %arg1[%c0, %c0_2] : memref<2x512xf32, #tpu.memory_space<vmem>>, vector<2x512xf32>
    %22 = vector.broadcast %20 : vector<1x512xf32> to vector<2x512xf32>
    %23 = arith.addf %21, %22 : vector<2x512xf32>
    %c0_3 = arith.constant 0 : index
    %c0_4 = arith.constant 0 : index
    %24 = vector.load %arg2[%c0_3, %c0_4] : memref<2x512xf32, #tpu.memory_space<vmem>>, vector<2x512xf32>
    tpu.vector_store %arg2[%c0_3, %c0_4], %23 {strides = array<i32>} : memref<2x512xf32, #tpu.memory_space<vmem>>, vector<2x512xf32>,
    return
  }
  func.func @transform_0(%arg0: i32) -> (i32, i32) {
    %c0_i32 = arith.constant 0 : i32
    %c0_i32_0 = arith.constant 0 : i32
    return %arg0, %c0_i32 : i32, i32
  }
  func.func @transform_1(%arg0: i32) -> (i32, i32) {
    %c0_i32 = arith.constant 0 : i32
    %c0_i32_0 = arith.constant 0 : i32
    return %arg0, %c0_i32 : i32, i32
  }
}

</mosaic_0001>

<bundles_post_ra>
// kernel: tpu_custom_call.1
= control target key start
LH: loop header
LB: loop body
LE: loop exit
PB: predicated region body
PF: predicated region fallthrough
CT: control target
= control target key end

     0   :  { %6 = vsyncpa [#allocation3], 0  ;;  %s973_s0 = inlined_call_operand.hbm [shape: f32[2,512], index: 0, kind: input, shape index: {}]   ;;  %s974_s1 = inlined_call_operand.hbm [shape: f32[2,512], index: 1, kind: output, shape index: {}]  }
   0x1   :  { %7 = vsyncpa [#allocation4], 0  ;;  %s647_s6 = smov [#allocation2]   ;;  %s599_s10 = scalar_lea.hbm %s973_s0, 128 }
   0x2   :  { %s14_s7 = sshll.u32 %s647_s6, 4  ;;  %p600_p0 = scmp.ne.s32.totalorder %s973_s0, %s599_s10  ;;  %s15_s7 = int_to_ptr.vmem [resolvable:$true] %s14_s7 }
   0x3   :  { %p603_p1 = scmp.lt.u32.totalorder %s599_s10, %s973_s0 }
   0x5   :  { %p605_p2 = pnand %p603_p1, %p600_p0 }
   0x7   :  { %608 = shalt.err (!%p605_p2)
}
   0x8   :  { %s609_s15 = scalar_lea.vmem %s15_s7, 128  ;;  %p614_p4 = scmp.lt.s32.totalorder %s15_s7, %s15_s7 }
   0x9   :  { %p610_p3 = scmp.ne.s32.totalorder %s15_s7, %s609_s15  ;;  %p615_p5 = scmp.lt.s32.totalorder %s609_s15, %s609_s15 }
   0xb   :  { %p616_p6 = por %p615_p5, %p614_p4 }
   0xd   :  { %p617_p7 = pnand %p616_p6, %p610_p3 }
   0xf   :  { %620 = shalt.err (!%p617_p7)
}
  0x10   :  { %17 = dma.hbm_to_vmem [thread:$0]  %s973_s0, 128, %s15_s7, [#allocation3]  }
  0x11   :  { %643 = dma.done.wait [#allocation3], 128  }
  0x12   :  { %644 = vsyncadd [#allocation3], 4294967168  ;;  %v21_v0 = vlaneseq  ;;  %s655_s0 = smov [#allocation5]  }
  0x13   :  { %s525_s18 = sshll.u32 %s655_s0, 4  ;;  %s526_s18 = int_to_ptr.vmem [resolvable:$true] %s525_s18 }
  0x14   :  { %v22_v1 = vand.u32 127, %v21_v0  ;;  %s621_s19 = scalar_lea.vmem %s526_s18, 128  ;;  %p626_p9 = scmp.lt.s32.totalorder %s526_s18, %s526_s18 }
  0x15   :  { %p622_p8 = scmp.ne.s32.totalorder %s526_s18, %s621_s19  ;;  %p627_p10 = scmp.lt.s32.totalorder %s621_s19, %s621_s19 }
  0x16   :  { %v23_v2 = vadd.s32 128, %v22_v1  ;;  %v24_v3 = vadd.s32 256, %v22_v1  ;;  %v26_v4 = vshra.s32 %v22_v1, 4  ;;  %v25_v18 = vadd.s32 384, %v22_v1 }
  0x17   :  { %v30_v24 = vand.u32 15, %v22_v1  ;;  %p628_p11 = por %p627_p10, %p626_p9 }
  0x18   :  { %v27_v5 = vshra.s32 %v23_v2, 4  ;;  %v28_v6 = vshra.s32 %v24_v3, 4  ;;  %v38_v7 = vand.u32 1, %v26_v4  ;;  %v29_v23 = vshra.s32 %v25_v18, 4 }
  0x19   :  { %v31_v25 = vand.u32 15, %v23_v2  ;;  %v32_v26 = vand.u32 15, %v24_v3  ;;  %v34_v30 = vcvt.s32.f32 %v30_v24  ;;  %v33_v58 = vand.u32 15, %v25_v18  ;;  %p629_p12 = pnand %p628_p11, %p622_p8 }
  0x1a   :  { %v39_v8 = vand.u32 1, %v27_v5  ;;  %v40_v9 = vand.u32 1, %v28_v6  ;;  %v46_v10 = vsub.s32 %v26_v4, %v38_v7  ;;  %v42_v27 = vcvt.s32.f32 %v38_v7 }
  0x1b   :  { %v41_v28 = vand.u32 1, %v29_v23  ;;  %v35_v31 = vcvt.s32.f32 %v31_v25  ;;  %v36_v33 = vcvt.s32.f32 %v32_v26 }
  0x1c   :  { %v47_v11 = vsub.s32 %v27_v5, %v39_v8  ;;  %v48_v12 = vsub.s32 %v28_v6, %v40_v9  ;;  %v50_v13 = vcvt.s32.f32 %v46_v10  ;;  %v43_v29 = vcvt.s32.f32 %v39_v8 }
  0x1d   :  { %v44_v32 = vcvt.s32.f32 %v40_v9  ;;  %v70_v34 = vmul.f32 1.5707964, %v42_v27  ;;  %v49_v36 = vsub.s32 %v29_v23, %v41_v28  ;;  %v45_v60 = vcvt.s32.f32 %v41_v28 }
  0x1e   :  { %v51_v14 = vcvt.s32.f32 %v47_v11  ;;  %v52_v15 = vcvt.s32.f32 %v48_v12  ;;  %v54_v16 = vmul.f32 -0.28782314, %v50_v13  ;;  %v71_v37 = vmul.f32 1.5707964, %v43_v29 }
  0x1f   :  { %v72_v42 = vmul.f32 1.5707964, %v44_v32  ;;  %v53_v45 = vcvt.s32.f32 %v49_v36  ;;  %v694_v5 = vcvt.s32.f32 %v33_v58  ;;  %v696_v8 = vmul.f32 1.5707964, %v45_v60 }
  0x20   :  { %v55_v17 = vmul.f32 -0.28782314, %v51_v14  ;;  %v56_v19 = vmul.f32 -0.28782314, %v52_v15  ;;  %v58_v20 = vmul.f32 1.442695, %v54_v16 }
  0x21   :  { %v57_v53 = vmul.f32 -0.28782314, %v53_v45  ;;  %v648_v15 = vmov 683565275   ;;  %v652_v23 = vmov 920167782  }
  0x22   :  { %v60_v21 = vmul.f32 1.442695, %v55_v17  ;;  %575 = vpow2.f32 %v58_v20  ;;  %v62_v22 = vmul.f32 1.442695, %v56_v19  ;;  %v649_v17 = vmov 2475754826  }
  0x23   :  { %v64_v63 = vmul.f32 1.442695, %v57_v53  ;;  %v650_v19 = vmov 2131351028  }
  0x24   :  { %577 = vpow2.f32 %v60_v21  ;;  %v651_v21 = vmov 2102212464  }
  0x25   :  { %579 = vpow2.f32 %v62_v22 }
  0x26   :  { %581 = vpow2.f32 %v64_v63 }
  0x2c   :  { %v576_v35 = vpop.eup %575 }
  0x2d   :  { %v66_v39 = vmul.f32 %v576_v35, %v34_v30 }
  0x2e   :  { %v578_v38 = vpop.eup %577 }
  0x2f   :  { %v580_v40 = vpop.eup %579  ;;  %v67_v41 = vmul.f32 %v578_v38, %v35_v31  ;;  %v679_v44 = vadd.f32 %v70_v34, %v66_v39  ;;  %v653_v31 = vmov 1326507024  }
  0x30   :  { %v68_v43 = vmul.f32 %v580_v40, %v36_v33 }
  0x31   :  { %v681_v46 = vadd.f32 %v71_v37, %v67_v41  ;;  %v78_v47 = vand.u32 2147483647, %v679_v44  ;;  %v81_v48 = vand.u32 2139095040, %v679_v44 }
  0x32   :  { %v685_v49 = vadd.f32 %v72_v42, %v68_v43 }
  0x33   :  { %v182_v50 = vand.u32 2147483647, %v681_v46  ;;  %v82_v51 = vshrl.u32 %v81_v48, 23  ;;  %v185_v52 = vand.u32 2139095040, %v681_v46  ;;  %v85_v54 = vand.u32 8388607, %v78_v47 }
  0x34   :  { %v289_v59 = vand.u32 2139095040, %v685_v49 }
  0x35   :  { %v189_v55 = vand.u32 8388607, %v182_v50  ;;  %v534_v56 = vadd.s32 4294967169, %v82_v51  ;;  %v186_v57 = vshrl.u32 %v185_v52, 23  ;;  %v86_v1 = vor.u32 8388608, %v85_v54 }
  0x36   :  { %v290_v3 = vshrl.u32 %v289_v59, 23 }
  0x37   :  { %v88_v61 = vadd.s32 1, %v534_v56  ;;  %v538_v62 = vadd.s32 4294967169, %v186_v57  ;;  %v190_v2 = vor.u32 8388608, %v189_v55  ;;  %v698_v11 = vshll.u32 %v86_v1, 8  ;;  %v582_v57 = vpop.eup %581 }
  0x38   :  { %v542_v7 = vadd.s32 4294967169, %v290_v3 }
  0x39   :  { %vm89_vm0 = vcmp.gt.s32.totalorder %v88_v61, 0  ;;  %v192_v4 = vadd.s32 1, %v538_v62  ;;  %v700_v13 = vshll.u32 %v190_v2, 8 }
  0x3a   :  { %v90_v6 = vsel %vm89_vm0, %v88_v61, 0  ;;  %v707_v25 = vadd.s32 1, %v542_v7 }
  0x3b   :  { %v91_v9 = vshrl.u32 %v90_v6, 5  ;;  %v92_v10 = vand.u32 31, %v90_v6  ;;  %vm193_vm1 = vcmp.gt.s32.totalorder %v192_v4, 0 }
  0x3c   :  { %v194_v12 = vsel %vm193_vm1, %v192_v4, 0  ;;  %vm297_vm8 = vcmp.gt.s32.totalorder %v707_v25, 0 }
  0x3d   :  { %v93_v14 = vsub.s32 32, %v92_v10  ;;  %v95_v16 = vshll.u32 %v648_v15, %v92_v10  ;;  %v98_v18 = vshll.u32 %v649_v17, %v92_v10  ;;  %v101_v20 = vshll.u32 %v650_v19, %v92_v10 }
  0x3e   :  { %v104_v22 = vshll.u32 %v651_v21, %v92_v10  ;;  %v107_v24 = vshll.u32 %v652_v23, %v92_v10  ;;  %vm110_vm2 = vcmp.lt.s32.totalorder %v91_v9, 1  ;;  %vm111_vm3 = vcmp.lt.s32.totalorder %v91_v9, 2 }
  0x3f   :  { %v94_v26 = vshrl.u32 %v648_v15, %v93_v14  ;;  %v96_v27 = vshrl.u32 %v649_v17, %v93_v14  ;;  %v99_v28 = vshrl.u32 %v650_v19, %v93_v14  ;;  %v102_v29 = vshrl.u32 %v651_v21, %v93_v14 }
  0x40   :  { %v105_v30 = vshrl.u32 %v652_v23, %v93_v14  ;;  %v108_v32 = vshrl.u32 %v653_v31, %v93_v14  ;;  %vm112_vm4 = vcmp.lt.s32.totalorder %v91_v9, 3  ;;  %vm113_vm5 = vcmp.lt.s32.totalorder %v91_v9, 4 }
  0x41   :  { %v97_v33 = vor.u32 %v96_v27, %v95_v16  ;;  %v100_v34 = vor.u32 %v99_v28, %v98_v18  ;;  %v103_v35 = vor.u32 %v102_v29, %v101_v20  ;;  %v195_v38 = vshrl.u32 %v194_v12, 5 }
  0x42   :  { %v106_v36 = vor.u32 %v105_v30, %v104_v22  ;;  %v109_v37 = vor.u32 %v108_v32, %v107_v24  ;;  %v196_v39 = vand.u32 31, %v194_v12 }
  0x43   :  { %v114_v40 = vsel %vm110_vm2, %v94_v26, %v97_v33  ;;  %v115_v41 = vsel %vm113_vm5, %v103_v35, 2102212464  ;;  %v118_v42 = vsel %vm110_vm2, %v97_v33, %v100_v34  ;;  %v122_v43 = vsel %vm110_vm2, %v100_v34, %v103_v35 }
  0x44   :  { %v116_v45 = vsel %vm112_vm4, %v100_v34, %v115_v41  ;;  %v119_v48 = vsel %vm113_vm5, %v106_v36, 920167782  ;;  %v123_v51 = vsel %vm113_vm5, %v109_v37, 1326507024  ;;  %v197_v52 = vsub.s32 32, %v196_v39 }
  0x45   :  { %v117_v53 = vsel %vm111_vm3, %v114_v40, %v116_v45  ;;  %v120_v54 = vsel %vm112_vm4, %v103_v35, %v119_v48  ;;  %v124_v55 = vsel %vm112_vm4, %v106_v36, %v123_v51  ;;  %v199_v56 = vshll.u32 %v648_v15, %v196_v39 }
  0x46   :  { %v121_v58 = vsel %vm111_vm3, %v118_v42, %v120_v54  ;;  %v125_v59 = vsel %vm111_vm3, %v122_v43, %v124_v55  ;;  %v133_v60 = vmul.u32 %v698_v11, %v117_v53  ;;  %v198_v61 = vshrl.u32 %v648_v15, %v197_v52 }
  0x47   :  { %v728_v62 = vmul.u32.u64.low %v698_v11, %v125_v59  ;;  %v729_v63 = vmul.u32.u64.high %v698_v11, %v125_v59, %v728_v62  ;;  %v732_v1 = vmul.u32.u64.low %v698_v11, %v121_v58  ;;  %v733_v2 = vmul.u32.u64.high %v698_v11, %v121_v58, %v732_v1 }
  0x48   :  { %v200_v3 = vshrl.u32 %v649_v17, %v197_v52  ;;  %v202_v4 = vshll.u32 %v649_v17, %v196_v39  ;;  %v203_v6 = vshrl.u32 %v650_v19, %v197_v52  ;;  %v205_v7 = vshll.u32 %v650_v19, %v196_v39 }
  0x49   :  { %v206_v9 = vshrl.u32 %v651_v21, %v197_v52  ;;  %v208_v10 = vshll.u32 %v651_v21, %v196_v39  ;;  %v209_v12 = vshrl.u32 %v652_v23, %v197_v52  ;;  %v211_v14 = vshll.u32 %v652_v23, %v196_v39 }
  0x4a   :  { %v201_v16 = vor.u32 %v200_v3, %v199_v56  ;;  %v204_v11 = vor.u32 %v203_v6, %v202_v4  ;;  %v212_v18 = vshrl.u32 %v653_v31, %v197_v52  ;;  %vm214_vm6 = vcmp.lt.s32.totalorder %v195_v38, 1 }
  0x4b   :  { %vm135_vm7 = vc.u32 %v729_v63, %v732_v1  ;;  %v136_v20 = vadd.s32 1, %v733_v2  ;;  %v207_v22 = vor.u32 %v206_v9, %v205_v7  ;;  %v210_v24 = vor.u32 %v209_v12, %v208_v10 }
  0x4c   :  { %v213_v26 = vor.u32 %v212_v18, %v211_v14  ;;  %vm215_vm9 = vcmp.lt.s32.totalorder %v195_v38, 2  ;;  %vm216_vm10 = vcmp.lt.s32.totalorder %v195_v38, 3  ;;  %vm217_vm11 = vcmp.lt.s32.totalorder %v195_v38, 4 }
  0x4d   :  { %v137_v27 = vsel %vm135_vm7, %v136_v20, %v733_v2  ;;  %v218_v28 = vsel %vm214_vm6, %v198_v61, %v201_v16  ;;  %v222_v29 = vsel %vm214_vm6, %v201_v16, %v204_v11  ;;  %v219_v32 = vsel %vm217_vm11, %v207_v22, 2102212464 }
  0x4e   :  { %v138_v30 = vadd.s32 %v137_v27, %v133_v60  ;;  %v223_v33 = vsel %vm217_vm11, %v210_v24, 920167782  ;;  %v226_v34 = vsel %vm214_vm6, %v204_v11, %v207_v22  ;;  %v69_v35 = vmul.f32 %v582_v57, %v694_v5 }
  0x4f   :  { %v220_v36 = vsel %vm216_vm10, %v204_v11, %v219_v32  ;;  %v224_v37 = vsel %vm216_vm10, %v207_v22, %v223_v33  ;;  %v227_v39 = vsel %vm217_vm11, %v213_v26, 1326507024  ;;  %v298_v43 = vsel %vm297_vm8, %v707_v25, 0 }
  0x50   :  { %v139_v40 = vadd.s32 536870912, %v138_v30  ;;  %v225_v41 = vsel %vm215_vm9, %v222_v29, %v224_v37  ;;  %v228_v42 = vsel %vm216_vm10, %v210_v24, %v227_v39  ;;  %v221_v45 = vsel %vm215_vm9, %v218_v28, %v220_v36 }
  0x51   :  { %v229_v48 = vsel %vm215_vm9, %v226_v34, %v228_v42  ;;  %v761_v51 = vmul.u32.u64.low %v700_v13, %v225_v41  ;;  %v762_v52 = vmul.u32.u64.high %v700_v13, %v225_v41, %v761_v51  ;;  %v286_v55 = vand.u32 2147483647, %v685_v49 }
  0x52   :  { %v765_v5 = vshrl.u32 %v139_v40, 30  ;;  %v768_v53 = vmul.u32.u64.low %v700_v13, %v229_v48  ;;  %v769_v54 = vmul.u32.u64.high %v700_v13, %v229_v48, %v768_v53  ;;  %v300_v56 = vand.u32 31, %v298_v43 }
  0x53   :  { %v773_v25 = vadd.f32 %v696_v8, %v69_v35  ;;  %v237_v38 = vmul.u32 %v700_v13, %v221_v45  ;;  %v240_v58 = vadd.s32 1, %v762_v52  ;;  %v293_v61 = vand.u32 8388607, %v286_v55 }
  0x54   :  { %v141_v57 = vshll.u32 %v765_v5, 30  ;;  %v301_v59 = vsub.s32 32, %v300_v56  ;;  %vm239_vm12 = vc.u32 %v769_v54, %v761_v51  ;;  %v299_v2 = vshrl.u32 %v298_v43, 5 }
  0x55   :  { %v241_v60 = vsel %vm239_vm12, %v240_v58, %v762_v52  ;;  %v303_v8 = vshll.u32 %v648_v15, %v300_v56  ;;  %v393_v3 = vand.u32 2139095040, %v773_v25  ;;  %v306_v6 = vshll.u32 %v649_v17, %v300_v56 }
  0x56   :  { %v242_v62 = vadd.s32 %v241_v60, %v237_v38  ;;  %v785_v13 = vsub.s32 %v138_v30, %v141_v57  ;;  %v304_v4 = vshrl.u32 %v649_v17, %v301_v59  ;;  %v312_v7 = vshll.u32 %v651_v21, %v300_v56 }
  0x57   :  { %v307_v10 = vshrl.u32 %v650_v19, %v301_v59  ;;  %v309_v12 = vshll.u32 %v650_v19, %v300_v56  ;;  %v310_v14 = vshrl.u32 %v651_v21, %v301_v59  ;;  %v313_v16 = vshrl.u32 %v652_v23, %v301_v59 }
  0x58   :  { %v243_v9 = vadd.s32 536870912, %v242_v62  ;;  %v315_v11 = vshll.u32 %v652_v23, %v300_v56  ;;  %v316_v18 = vshrl.u32 %v653_v31, %v301_v59  ;;  %v294_v20 = vor.u32 8388608, %v293_v61 }
  0x59   :  { %v394_v22 = vshrl.u32 %v393_v3, 23  ;;  %v144_v24 = vsub.s32 0, %v785_v13  ;;  %v314_v27 = vor.u32 %v313_v16, %v312_v7  ;;  %vm318_vm13 = vcmp.lt.s32.totalorder %v299_v2, 1 }
  0x5a   :  { %v797_v26 = vshrl.u32 %v243_v9, 30  ;;  %v305_v28 = vor.u32 %v304_v4, %v303_v8  ;;  %v308_v29 = vor.u32 %v307_v10, %v306_v6  ;;  %v311_v30 = vor.u32 %v310_v14, %v309_v12 }
  0x5b   :  { %vm321_vm14 = vcmp.lt.s32.totalorder %v299_v2, 4  ;;  %v317_v33 = vor.u32 %v316_v18, %v315_v11  ;;  %vm320_vm15 = vcmp.lt.s32.totalorder %v299_v2, 3  ;;  %v302_v35 = vshrl.u32 %v648_v15, %v301_v59 }
  0x5c   :  { %v245_v32 = vshll.u32 %v797_v26, 30  ;;  %v327_v34 = vsel %vm321_vm14, %v314_v27, 920167782  ;;  %v334_v36 = vshll.u32 %v294_v20, 8  ;;  %v535_v37 = vmin.u32 %v144_v24, %v785_v13 }
  0x5d   :  { %vm319_vm0 = vcmp.lt.s32.totalorder %v299_v2, 2  ;;  %v546_v40 = vadd.s32 4294967169, %v394_v22  ;;  %v323_v41 = vsel %vm321_vm14, %v311_v30, 2102212464  ;;  %v326_v42 = vsel %vm318_vm13, %v305_v28, %v308_v29 }
  0x5e   :  { %v803_v39 = vsub.s32 %v242_v62, %v245_v32  ;;  %v328_v43 = vsel %vm320_vm15, %v311_v30, %v327_v34  ;;  %v330_v45 = vsel %vm318_vm13, %v308_v29, %v311_v30  ;;  %v331_v52 = vsel %vm321_vm14, %v317_v33, 1326507024 }
  0x5f   :  { %v322_v53 = vsel %vm318_vm13, %v302_v35, %v305_v28  ;;  %v332_v56 = vsel %vm320_vm15, %v314_v27, %v331_v52  ;;  %v324_v38 = vsel %vm320_vm15, %v308_v29, %v323_v41  ;;  %v329_v57 = vsel %vm319_vm0, %v326_v42, %v328_v43 }
  0x60   :  { %v248_v48 = vsub.s32 0, %v803_v39  ;;  %v333_v58 = vsel %vm319_vm0, %v330_v45, %v332_v56  ;;  %v400_v59 = vadd.s32 1, %v546_v40  ;;  %v146_v60 = vclz %v535_v37 }
  0x61   :  { %v817_v62 = vmul.u32.u64.low %v334_v36, %v333_v58  ;;  %v818_v8 = vmul.u32.u64.high %v334_v36, %v333_v58, %v817_v62  ;;  %v325_v3 = vsel %vm319_vm0, %v322_v53, %v324_v38  ;;  %v390_v11 = vand.u32 2147483647, %v773_v25 }
  0x62   :  { %v539_v61 = vmin.u32 %v248_v48, %v803_v39  ;;  %v821_v4 = vmul.u32.u64.low %v334_v36, %v329_v57  ;;  %v822_v6 = vmul.u32.u64.high %v334_v36, %v329_v57, %v821_v4  ;;  %vm401_vm1 = vcmp.gt.s32.totalorder %v400_v59, 0 }
  0x63   :  { %v536_v7 = vadd.s32 4294967294, %v146_v60  ;;  %v402_v10 = vsel %vm401_vm1, %v400_v59, 0  ;;  %v341_v12 = vmul.u32 %v334_v36, %v325_v3  ;;  %v397_v28 = vand.u32 8388607, %v390_v11 }
  0x64   :  { %v250_v9 = vclz %v539_v61  ;;  %vm343_vm2 = vc.u32 %v818_v8, %v821_v4  ;;  %v404_v14 = vand.u32 31, %v402_v10  ;;  %v344_v16 = vadd.s32 1, %v822_v6 }
  0x65   :  { %vm537_vm3 = vcmp.lt.s32.totalorder %v536_v7, 0  ;;  %v403_v29 = vshrl.u32 %v402_v10, 5  ;;  %v398_v52 = vor.u32 8388608, %v397_v28  ;;  %vm80_vm11 = vcmp.lt.s32.totalorder %v679_v44, 0 }
  0x66   :  { %v540_v2 = vadd.s32 4294967294, %v250_v9  ;;  %v345_v18 = vsel %vm343_vm2, %v344_v16, %v822_v6  ;;  %v405_v22 = vsub.s32 32, %v404_v14  ;;  %v830_v24 = vsel %vm537_vm3, 0, %v536_v7 }
  0x67   :  { %v346_v20 = vadd.s32 %v345_v18, %v341_v12  ;;  %v407_v30 = vshll.u32 %v648_v15, %v404_v14  ;;  %v410_v32 = vshll.u32 %v649_v17, %v404_v14  ;;  %v413_v36 = vshll.u32 %v650_v19, %v404_v14 }
  0x68   :  { %vm541_vm4 = vcmp.lt.s32.totalorder %v540_v2, 0  ;;  %v408_v34 = vshrl.u32 %v649_v17, %v405_v22  ;;  %v411_v35 = vshrl.u32 %v650_v19, %v405_v22  ;;  %v414_v37 = vshrl.u32 %v651_v21, %v405_v22 }
  0x69   :  { %v347_v27 = vadd.s32 536870912, %v346_v20  ;;  %v416_v40 = vshll.u32 %v651_v21, %v404_v14  ;;  %v417_v41 = vshrl.u32 %v652_v23, %v405_v22  ;;  %v419_v42 = vshll.u32 %v652_v23, %v404_v14 }
  0x6a   :  { %v154_v43 = vsub.s32 4294967266, %v830_v24  ;;  %v420_v48 = vshrl.u32 %v653_v31, %v405_v22  ;;  %v134_v17 = vadd.s32 %v732_v1, %v729_v63  ;;  %v150_v19 = vsub.s32 32, %v830_v24 }
  0x6b   :  { %v836_v33 = vshrl.u32 %v347_v27, 30  ;;  %v418_v53 = vor.u32 %v417_v41, %v416_v40  ;;  %v253_v56 = vsel %vm541_vm4, 0, %v540_v2  ;;  %v409_v57 = vor.u32 %v408_v34, %v407_v30 }
  0x6c   :  { %v421_v38 = vor.u32 %v420_v48, %v419_v42  ;;  %v412_v23 = vor.u32 %v411_v35, %v410_v32  ;;  %v415_v58 = vor.u32 %v414_v37, %v413_v36  ;;  %vm425_vm5 = vcmp.lt.s32.totalorder %v403_v29, 4 }
  0x6d   :  { %v349_v45 = vshll.u32 %v836_v33, 30  ;;  %v155_v59 = vadd.s32 127, %v154_v43  ;;  %vm422_vm6 = vcmp.lt.s32.totalorder %v403_v29, 1  ;;  %vm424_vm7 = vcmp.lt.s32.totalorder %v403_v29, 3 }
  0x6e   :  { %v406_v31 = vshrl.u32 %v648_v15, %v405_v22  ;;  %v431_v63 = vsel %vm425_vm5, %v418_v53, 920167782  ;;  %v435_v1 = vsel %vm425_vm5, %v421_v38, 1326507024  ;;  %v438_v61 = vshll.u32 %v398_v52, 8 }
  0x6f   :  { %v852_v21 = vsub.s32 %v346_v20, %v349_v45  ;;  %v258_v62 = vsub.s32 4294967266, %v253_v56  ;;  %vm423_vm8 = vcmp.lt.s32.totalorder %v403_v29, 2  ;;  %v427_v6 = vsel %vm425_vm5, %v415_v58, 2102212464 }
  0x70   :  { %v430_v7 = vsel %vm422_vm6, %v409_v57, %v412_v23  ;;  %v432_v9 = vsel %vm424_vm7, %v415_v58, %v431_v63  ;;  %v434_v10 = vsel %vm422_vm6, %v412_v23, %v415_v58  ;;  %v436_v12 = vsel %vm424_vm7, %v418_v53, %v435_v1 }
  0x71   :  { %v352_v60 = vsub.s32 0, %v852_v21  ;;  %v238_v14 = vadd.s32 %v761_v51, %v769_v54  ;;  %v151_v16 = vshll.u32 %v785_v13, %v830_v24  ;;  %v254_v2 = vsub.s32 32, %v253_v56 }
  0x72   :  { %v426_v18 = vsel %vm422_vm6, %v406_v31, %v409_v57  ;;  %v428_v20 = vsel %vm424_vm7, %v412_v23, %v427_v6  ;;  %v259_v22 = vadd.s32 127, %v258_v62  ;;  %v433_v28 = vsel %vm423_vm8, %v430_v7, %v432_v9 }
  0x73   :  { %v543_v3 = vmin.u32 %v352_v60, %v852_v21  ;;  %v437_v30 = vsel %vm423_vm8, %v434_v10, %v436_v12  ;;  %v152_v32 = vshrl.u32 %v134_v17, %v150_v19  ;;  %v156_v34 = vshll.u32 %v155_v59, 23 }
  0x74   :  { %v869_v35 = vmul.u32.u64.low %v438_v61, %v437_v30  ;;  %v870_v36 = vmul.u32.u64.high %v438_v61, %v437_v30, %v869_v35  ;;  %v429_v51 = vsel %vm423_vm8, %v426_v18, %v428_v20  ;;  %v255_v37 = vshll.u32 %v803_v39, %v253_v56 }
  0x75   :  { %v354_v15 = vclz %v543_v3  ;;  %v873_v54 = vmul.u32.u64.low %v438_v61, %v433_v28  ;;  %v874_v13 = vmul.u32.u64.high %v438_v61, %v433_v28, %v873_v54  ;;  %v256_v40 = vshrl.u32 %v238_v14, %v254_v2 }
  0x76   :  { %v260_v41 = vshll.u32 %v259_v22, 23  ;;  %v342_v43 = vadd.s32 %v821_v4, %v818_v8  ;;  %v445_v48 = vmul.u32 %v438_v61, %v429_v51  ;;  %v153_v17 = vor.u32 %v152_v32, %v151_v16 }
  0x77   :  { %v544_v27 = vadd.s32 4294967294, %v354_v15  ;;  %vm447_vm10 = vc.u32 %v870_v36, %v873_v54  ;;  %v157_v52 = vor.u32 4788187, %v156_v34  ;;  %v448_v53 = vadd.s32 1, %v874_v13 }
  0x78   :  { %v257_v19 = vor.u32 %v256_v40, %v255_v37  ;;  %v261_v38 = vor.u32 4788187, %v260_v41  ;;  %v160_v8 = vcvt.s32.f32 %v153_v17  ;;  %vm889_vm12 = vcmp.le.f32.partialorder %v78_v47, 0.7853982 }
  0x79   :  { %vm545_vm9 = vcmp.lt.s32.totalorder %v544_v27, 0  ;;  %v449_v57 = vsel %vm447_vm10, %v448_v53, %v874_v13  ;;  %v158_v59 = vand.u32 2147483647, %v157_v52  ;;  %vm184_vm13 = vcmp.lt.s32.totalorder %v681_v46, 0 }
  0x7a   :  { %v357_v24 = vsel %vm545_vm9, 0, %v544_v27  ;;  %v450_v58 = vadd.s32 %v449_v57, %v445_v48  ;;  %v264_v60 = vcvt.s32.f32 %v257_v19  ;;  %v262_v31 = vand.u32 2147483647, %v261_v38 }
  0x7b   :  { %v362_v42 = vsub.s32 4294967266, %v357_v24  ;;  %v358_v45 = vsub.s32 32, %v357_v24  ;;  %v359_v39 = vshll.u32 %v852_v21, %v357_v24  ;;  %v161_v62 = vmul.f32 %v160_v8, %v158_v59 }
  0x7c   :  { %v451_v4 = vadd.s32 536870912, %v450_v58  ;;  %v265_v6 = vmul.f32 %v264_v60, %v262_v31  ;;  %v164_v20 = vsub.s32 4, %v765_v5  ;;  %vm899_vm14 = vcmp.le.f32.partialorder %v182_v50, 0.7853982 }
  0x7d   :  { %v363_v29 = vadd.s32 127, %v362_v42  ;;  %v360_v56 = vshrl.u32 %v342_v43, %v358_v45  ;;  %v162_v21 = vxor.u32 2147483648, %v161_v62  ;;  %vm288_vm15 = vcmp.lt.s32.totalorder %v685_v49, 0 }
  0x7e   :  { %v883_v61 = vshrl.u32 %v451_v4, 30  ;;  %v266_v14 = vxor.u32 2147483648, %v265_v6  ;;  %v165_v34 = vsel %vm80_vm11, %v164_v20, %v765_v5  ;;  %vm914_vm0 = vcmp.le.f32.partialorder %v286_v55, 0.7853982 }
  0x7f   :  { %v364_v23 = vshll.u32 %v363_v29, 23  ;;  %v361_v63 = vor.u32 %v360_v56, %v359_v39  ;;  %v163_v18 = vsel %vm80_vm11, %v162_v21, %v161_v62  ;;  %v446_v35 = vadd.s32 %v873_v54, %v870_v36 }
  0x80   :  { %v453_v3 = vshll.u32 %v883_v61, 30  ;;  %v166_v47 = vsel %vm889_vm12, %v679_v44, %v163_v18  ;;  %v267_v28 = vsel %vm184_vm13, %v266_v14, %v265_v6  ;;  %v268_v51 = vsub.s32 4, %v797_v26 }
  0x81   :  { %v365_v1 = vor.u32 4788187, %v364_v23  ;;  %v368_v9 = vcvt.s32.f32 %v361_v63  ;;  %583 = vcosq.f32 %v166_v47  ;;  %v270_v13 = vsel %vm899_vm14, %v681_v46, %v267_v28 }
  0x82   :  { %v454_v10 = vsub.s32 %v450_v58, %v453_v3  ;;  %585 = vsinq.f32 %v166_v47  ;;  %v167_v41 = vsel %vm889_vm12, 0, %v165_v34  ;;  %v269_v42 = vsel %vm184_vm13, %v268_v51, %v797_v26 }
  0x83   :  { %v366_v7 = vand.u32 2147483647, %v365_v1  ;;  %587 = vcosq.f32 %v270_v13  ;;  %v372_v43 = vsub.s32 4, %v836_v33  ;;  %v171_v52 = vadd.s32 3, %v167_v41 }
  0x84   :  { %v456_v12 = vsub.s32 0, %v454_v10  ;;  %589 = vsinq.f32 %v270_v13  ;;  %v271_v29 = vsel %vm899_vm14, 0, %v269_v42  ;;  %v476_v57 = vsub.s32 4, %v883_v61 }
  0x85   :  { %v369_v15 = vmul.f32 %v368_v9, %v366_v7  ;;  %v373_v26 = vsel %vm288_vm15, %v372_v43, %v836_v33  ;;  %v275_v56 = vadd.s32 3, %v271_v29  ;;  %v172_v23 = vand.u32 3, %v171_v52  ;;  %v494_v29 = vld [vmem:[#allocation2] sm:$0xff] }
  0x86   :  { %v547_v16 = vmin.u32 %v456_v12, %v454_v10  ;;  %v375_v58 = vsel %vm914_vm0, 0, %v373_v26  ;;  %vm392_vm2 = vcmp.lt.s32.totalorder %v773_v25, 0  ;;  %vm945_vm3 = vcmp.le.f32.partialorder %v390_v11, 0.7853982 }
  0x87   :  { %v370_v30 = vxor.u32 2147483648, %v369_v15  ;;  %v477_v31 = vsel %vm392_vm2, %v476_v57, %v883_v61  ;;  %v276_v1 = vand.u32 3, %v275_v56  ;;  %v379_v62 = vadd.s32 3, %v375_v58 }
  0x88   :  { %v458_v22 = vclz %v547_v16  ;;  %vm174_vm4 = vcmp.eq.s32.totalorder %v172_v23, 0  ;;  %v479_v11 = vsel %vm945_vm3, 0, %v477_v31  ;;  %vm177_vm5 = vcmp.eq.s32.totalorder %v172_v23, 2 }
  0x89   :  { %v371_v5 = vsel %vm288_vm15, %v370_v30, %v369_v15  ;;  %vm278_vm6 = vcmp.eq.s32.totalorder %v276_v1, 0  ;;  %vm281_vm7 = vcmp.eq.s32.totalorder %v276_v1, 2  ;;  %v380_v14 = vand.u32 3, %v379_v62 }
  0x8a   :  { %v548_v32 = vadd.s32 4294967294, %v458_v22  ;;  %v374_v45 = vsel %vm914_vm0, %v685_v49, %v371_v5  ;;  %v483_v15 = vadd.s32 3, %v479_v11  ;;  %vm173_vm8 = vcmp.lt.s32.totalorder %v172_v23, 2 }
  0x8b   :  { %591 = vcosq.f32 %v374_v45  ;;  %v584_v39 = vpop.eup %583  ;;  %vm277_vm9 = vcmp.lt.s32.totalorder %v276_v1, 2  ;;  %vm382_vm10 = vcmp.eq.s32.totalorder %v380_v14, 0  ;;  %vm385_vm11 = vcmp.eq.s32.totalorder %v380_v14, 2 }
  0x8c   :  { %vm549_vm1 = vcmp.lt.s32.totalorder %v548_v32, 0  ;;  %593 = vsinq.f32 %v374_v45  ;;  %v586_v8 = vpop.eup %585  ;;  %v178_v7 = vxor.u32 2147483648, %v584_v39  ;;  %v654_v47 = vmov 1983009808  }
  0x8d   :  { %v461_v24 = vsel %vm549_vm1, 0, %v548_v32  ;;  %v588_v4 = vpop.eup %587  ;;  %v175_v6 = vxor.u32 2147483648, %v586_v8  ;;  %v502_v28 = vunpack.c.l.s4 %v654_v47  ;;  %v484_v30 = vand.u32 3, %v483_v15 }
  0x8e   :  { %v462_v37 = vsub.s32 32, %v461_v24  ;;  %v463_v40 = vshll.u32 %v454_v10, %v461_v24  ;;  %v466_v55 = vsub.s32 4294967266, %v461_v24  ;;  %v590_v63 = vpop.eup %589  ;;  %v282_v12 = vxor.u32 2147483648, %v588_v4 }
  0x8f   :  { %v279_v21 = vxor.u32 2147483648, %v590_v63  ;;  %v176_v16 = vsel %vm174_vm4, %v584_v39, %v175_v6  ;;  %v179_v2 = vsel %vm177_vm5, %v178_v7, %v586_v8  ;;  %vm170_vm12 = vweird.f32 %v679_v44 }
  0x90   :  { %v464_v36 = vshrl.u32 %v446_v35, %v462_v37  ;;  %v467_v54 = vadd.s32 127, %v466_v55  ;;  %v283_v20 = vsel %vm281_vm7, %v282_v12, %v590_v63  ;;  %v180_v32 = vsel %vm173_vm8, %v176_v16, %v179_v2 }
  0x91   :  { %v280_v18 = vsel %vm278_vm6, %v588_v4, %v279_v21  ;;  %vm274_vm13 = vweird.f32 %v681_v46  ;;  %vm381_vm14 = vcmp.lt.s32.totalorder %v380_v14, 2  ;;  %v503_v51 = vunpack.c.0.s8 %v502_v28 }
  0x92   :  { %v465_v48 = vor.u32 %v464_v36, %v463_v40  ;;  %v468_v17 = vshll.u32 %v467_v54, 23  ;;  %v284_v34 = vsel %vm277_vm9, %v280_v18, %v283_v20  ;;  %v505_v13 = vshrl.u32 %v21_v0, 7 }
  0x93   :  { %v181_v5 = vsel %vm170_vm12, nan, %v180_v32  ;;  %v285_v37 = vsel %vm274_vm13, nan, %v284_v34  ;;  %vm489_vm15 = vcmp.eq.s32.totalorder %v484_v30, 2  ;;  %vm378_vm0 = vweird.f32 %v685_v49 }
  0x94   :  { %v469_v53 = vor.u32 4788187, %v468_v17  ;;  %v472_v19 = vcvt.s32.f32 %v465_v48  ;;  %vm486_vm1 = vcmp.eq.s32.totalorder %v484_v30, 0  ;;  %v499_v36 = vcombine.low %v181_v5, %v285_v37 }
  0x95   :  { %v592_v10 = vpop.eup %591  ;;  %v506_v54 = vsub.s32 %v503_v51, %v505_v13 }
  0x96   :  { %v470_v38 = vand.u32 2147483647, %v469_v53  ;;  %v594_v61 = vpop.eup %593  ;;  %v386_v27 = vxor.u32 2147483648, %v592_v10 }
  0x97   :  { %v383_v22 = vxor.u32 2147483648, %v594_v61  ;;  %v507_v17 = vrot.slane %v499_v36, %v506_v54 }
  0x98   :  { %v473_v59 = vmul.f32 %v472_v19, %v470_v38  ;;  %v387_v35 = vsel %vm385_vm11, %v386_v27, %v594_v61 }
  0x99   :  { %v384_v50 = vsel %vm382_vm10, %v592_v10, %v383_v22 }
  0x9a   :  { %v474_v33 = vxor.u32 2147483648, %v473_v59  ;;  %v388_v55 = vsel %vm381_vm14, %v384_v50, %v387_v35 }
  0x9b   :  { %v389_v42 = vsel %vm378_vm0, nan, %v388_v55 }
  0x9c   :  { %v475_v3 = vsel %vm392_vm2, %v474_v33, %v473_v59  ;;  %vm485_vm2 = vcmp.lt.s32.totalorder %v484_v30, 2 }
  0x9d   :  { %v478_v9 = vsel %vm945_vm3, %v773_v25, %v475_v3  ;;  %vm482_vm3 = vweird.f32 %v773_v25 }
  0x9e   :  { %595 = vcosq.f32 %v478_v9 }
  0x9f   :  { %597 = vsinq.f32 %v478_v9 }
  0xa8   :  { %v596_v24 = vpop.eup %595 }
  0xa9   :  { %v598_v40 = vpop.eup %597  ;;  %v490_v44 = vxor.u32 2147483648, %v596_v24 }
  0xaa   :  { %v487_v41 = vxor.u32 2147483648, %v598_v40 }
  0xab   :  { %v491_v46 = vsel %vm489_vm15, %v490_v44, %v598_v40 }
  0xac   :  { %v488_v43 = vsel %vm486_vm1, %v596_v24, %v487_v41 }
  0xad   :  { %v492_v0 = vsel %vm485_vm2, %v488_v43, %v491_v46 }
  0xae   :  { %v493_v45 = vsel %vm482_vm3, nan, %v492_v0 }
  0xaf   :  { %v500_v48 = vcombine.low %v389_v42, %v493_v45 }
  0xb1   :  { %v514_v52 = vrot.slane %v500_v48, %v506_v54 }
  0xb3   :  { %v515_v49 = vcombine.low %v507_v17, %v514_v52 }
  0xb5   :  { %v517_v53 = vadd.f32 %v515_v49, %v494_v29 }
  0xb7   :  { %518 = vst [vmem:[#allocation5] sm:$0xff] %v517_v53 }
  0xb8   :  { %632 = shalt.err (!%p629_p12)
}
  0xb9   :  { %s633_s22 = scalar_lea.hbm %s974_s1, 128 }
  0xba   :  { %p634_p13 = scmp.ne.s32.totalorder %s974_s1, %s633_s22  ;;  %p637_p0 = scmp.lt.u32.totalorder %s633_s22, %s974_s1 }
  0xbc   :  { %p639_p1 = pnand %p637_p0, %p634_p13 }
  0xbe   :  { %642 = shalt.err (!%p639_p1)
}
  0xbf   :  { %528 = dma.vmem_to_hbm [thread:$0]  %s526_s18, 128, %s974_s1, [#allocation4]  }
  0xc0   :  { %645 = dma.done.wait [#allocation4], 128  }
  0xc1   :  { %646 = vsyncadd [#allocation4], 4294967168 }
  0xc2   :  { %532 = vsyncpa [#allocation3], 1 }
  0xc3   :  { %533 = vsyncpa [#allocation4], 1 }

</bundles_post_ra>
